<compile_context>
chip_gen: v7x
topology: tpu7x:2x2x1
jax: 0.10.0
libtpu: 0.0.40
codegen_flags: <defaults>
</compile_context>

<pallas_src>
import math

import jax
import jax.numpy as jnp
from jax.experimental import pallas as pl
from jax.experimental.pallas import tpu as pltpu


_TWO_PI = 2.0 * math.pi
_TARGET_TILE_BYTES = 2 << 20     # ~2 MiB output tile: large-tile regime, safe VMEM
_MIN_STEPS = 8                   # keep grid/pipeline non-trivial (v7x megacore)
_PALLAS_MIN_OUT_BYTES = 4 << 20  # below this, fused jnp beats launch overhead


def _round_up(x, m):
    return ((x + m - 1) // m) * m


def _make_gfp_kernel(h, out_dtype):
    """Kernel factory; h = embed_dim // 2 (static), out_dtype static."""
    aligned = (h % 128 == 0)

    def kernel(t_ref, w_ref, out_ref):
        # t_ref: (TB, 1), w_ref: (1, H), out_ref: (TB, 2H)
        # Multiply order matches the reference exactly: (t*W) then *(2*pi).
        proj = (t_ref[...] * w_ref[...]) * _TWO_PI      # (TB, H), f32
        s = jnp.sin(proj).astype(out_dtype)
        c = jnp.cos(proj).astype(out_dtype)
        if aligned:
            # Both half stores start on a 128-lane tile boundary -> dense vst.
            out_ref[:, :h] = s
            out_ref[:, h:] = c
        else:
            # Splice in-VMEM (XLU work, hidden under the store/DMA bound) and
            # issue a single full-width store instead of a misaligned one.
            out_ref[...] = jnp.concatenate([s, c], axis=-1)

    return kernel


def _pick_tb(batch, row_bytes):
    """Rows per tile: byte-targeted, >=8-step grid, prefer divisor of batch."""
    tb = max(8, min(batch, _TARGET_TILE_BYTES // row_bytes))
    tb = max(8, (tb // 8) * 8)
    # Keep at least _MIN_STEPS grid steps when the batch allows it.
    steps_cap = max(8, _round_up(-(-batch // _MIN_STEPS), 8))
    tb = min(tb, steps_cap)
    # Prefer a tile that divides batch exactly: no padding, no out[:B] copy.
    if batch % 8 == 0:
        lo = max(8, tb // 2)
        for cand in range(tb, lo - 1, -8):
            if batch % cand == 0:
                return cand
    return tb


def _gfp_pallas(t2d, w2d, tb, out_dtype):
    """t2d: (B_pad, 1) f32, w2d: (1, H) f32, tb divides B_pad."""
    b_pad = t2d.shape[0]
    h = w2d.shape[1]
    itemsize = jnp.dtype(out_dtype).itemsize
    grid = (b_pad // tb,)
    return pl.pallas_call(
        _make_gfp_kernel(h, out_dtype),
        out_shape=jax.ShapeDtypeStruct((b_pad, 2 * h), out_dtype),
        grid=grid,
        in_specs=[
            pl.BlockSpec((tb, 1), lambda i: (i, 0)),   # batch tile of t
            pl.BlockSpec((1, h), lambda i: (0, 0)),    # W broadcast to every tile
        ],
        out_specs=pl.BlockSpec((tb, 2 * h), lambda i: (i, 0)),
        compiler_params=pltpu.CompilerParams(
            dimension_semantics=("parallel",),
        ),
        cost_estimate=pl.CostEstimate(
            flops=2 * b_pad * h,
            transcendentals=2 * b_pad * h,
            bytes_accessed=b_pad * 2 * h * itemsize + b_pad * 4 + h * 4,
        ),
    )(t2d, w2d)


def gaussian_fourier_projection(t, W, *, out_dtype=jnp.float32, force_pallas=False):
    """t: (B,) float, W: (embed_dim//2,) float -> (B, embed_dim) out_dtype.

    Matches torch: cat([sin(t[:,None]*W[None,:]*2*pi), cos(...)], dim=-1).
    """
    B = t.shape[0]
    H = W.shape[0]
    t32 = t.astype(jnp.float32)
    w32 = W.astype(jnp.float32)
    itemsize = jnp.dtype(out_dtype).itemsize
    out_bytes = B * 2 * H * itemsize

    if not force_pallas and out_bytes < _PALLAS_MIN_OUT_BYTES:
        # Small outputs: XLA fuses this fine; Pallas launch overhead dominates.
        proj = (t32[:, None] * w32[None, :]) * _TWO_PI
        return jnp.concatenate([jnp.sin(proj), jnp.cos(proj)], axis=-1).astype(out_dtype)

    tb = _pick_tb(B, 2 * H * itemsize)
    b_pad = _round_up(B, tb)

    t2d = t32.reshape(B, 1)
    if b_pad != B:
        t2d = jnp.pad(t2d, ((0, b_pad - B), (0, 0)))
    w2d = w32.reshape(1, H)

    out = _gfp_pallas(t2d, w2d, tb, out_dtype)
    return out[:B] if b_pad != B else out


def reference(t, W):
    t32 = t.astype(jnp.float32)
    w32 = W.astype(jnp.float32)
    proj = (t32[:, None] * w32[None, :]) * _TWO_PI
    return jnp.concatenate([jnp.sin(proj), jnp.cos(proj)], axis=-1)


if __name__ == "__main__":
    key = jax.random.PRNGKey(0)
    k_w, k_t = jax.random.split(key)

    scale = 30.0
    batch = 20  # deliberately NOT a multiple of the row tile (exercises padding)

    t = jax.random.uniform(k_t, (batch,), dtype=jnp.float32)

    # Case 1: narrow embed_dim (H % 128 != 0) -> concat + single full-width store.
    embed_dim = 32
    W = jax.random.normal(k_w, (embed_dim // 2,), dtype=jnp.float32) * scale
    out = jax.block_until_ready(
        gaussian_fourier_projection(t, W, force_pallas=True))
    ref = reference(t, W)
    assert out.shape == (batch, embed_dim), out.shape
    assert jnp.allclose(out, ref, atol=1e-4, rtol=1e-4), "mismatch (narrow path)"

    # Case 2: lane-aligned embed_dim (H = 128) -> two dense half stores.
    embed_dim2 = 256
    W2 = jax.random.normal(k_w, (embed_dim2 // 2,), dtype=jnp.float32) * scale
    out2 = jax.block_until_ready(
        gaussian_fourier_projection(t, W2, force_pallas=True))
    ref2 = reference(t, W2)
    assert out2.shape == (batch, embed_dim2), out2.shape
    assert jnp.allclose(out2, ref2, atol=1e-4, rtol=1e-4), "mismatch (aligned path)"

    # Case 3: small-output jnp fallback path.
    out_fb = jax.block_until_ready(gaussian_fourier_projection(t, W))
    assert jnp.allclose(out_fb, ref, atol=1e-4, rtol=1e-4), "fallback mismatch"

    print("KERNEL_OK")
</pallas_src>

<mosaic_0001>
module attributes {stable_mosaic.version = 11 : i64} {
  func.func @kernel(%arg0: i32, %arg1: memref<8x1xf32, #tpu.memory_space<vmem>>, %arg2: memref<1x16xf32, #tpu.memory_space<vmem>>, %arg3: memref<8x32xf32, #tpu.memory_space<vmem>>) attributes {dimension_semantics = [#tpu.dimension_semantics<parallel>], iteration_bounds = array<i64: 3>, scalar_prefetch = 0 : i64, scratch_operands = 0 : i64, tpu.core_type = #tpu.core_type<tc>, window_params = [{transform_indices = @transform_0, window_bounds = array<i64: 8, 1>}, {pipeline_mode = #tpu.pipeline_mode<synchronous>, transform_indices = @transform_1, window_bounds = array<i64: 1, 16>}, {transform_indices = @transform_2, window_bounds = array<i64: 8, 32>}]} {
    %c0 = arith.constant 0 : index
    %c0_0 = arith.constant 0 : index
    %0 = vector.load %arg1[%c0, %c0_0] : memref<8x1xf32, #tpu.memory_space<vmem>>, vector<8x1xf32>
    %c0_1 = arith.constant 0 : index
    %c0_2 = arith.constant 0 : index
    %1 = vector.load %arg2[%c0_1, %c0_2] : memref<1x16xf32, #tpu.memory_space<vmem>>, vector<1x16xf32>
    %2 = vector.broadcast %0 : vector<8x1xf32> to vector<8x16xf32>
    %3 = vector.broadcast %1 : vector<1x16xf32> to vector<8x16xf32>
    %4 = arith.mulf %2, %3 : vector<8x16xf32>
    %cst = arith.constant 6.28318548 : f32
    %5 = vector.broadcast %cst : f32 to vector<8x16xf32>
    %6 = arith.mulf %4, %5 : vector<8x16xf32>
    %7 = math.sin %6 : vector<8x16xf32>
    %8 = math.cos %6 : vector<8x16xf32>
    %9 = tpu.concatenate %7, %8 in 1 : vector<8x16xf32>, vector<8x16xf32> -> vector<8x32xf32>
    %c0_3 = arith.constant 0 : index
    %c0_4 = arith.constant 0 : index
    %10 = vector.load %arg3[%c0_3, %c0_4] : memref<8x32xf32, #tpu.memory_space<vmem>>, vector<8x32xf32>
    tpu.vector_store %arg3[%c0_3, %c0_4], %9 {strides = array<i32>} : memref<8x32xf32, #tpu.memory_space<vmem>>, vector<8x32xf32>,
    return
  }
  func.func @transform_0(%arg0: i32) -> (i32, i32) {
    %c0_i32 = arith.constant 0 : i32
    %c0_i32_0 = arith.constant 0 : i32
    return %arg0, %c0_i32 : i32, i32
  }
  func.func @transform_1(%arg0: i32) -> (i32, i32) {
    %c0_i32 = arith.constant 0 : i32
    %c0_i32_0 = arith.constant 0 : i32
    %c0_i32_1 = arith.constant 0 : i32
    return %c0_i32, %c0_i32_0 : i32, i32
  }
  func.func @transform_2(%arg0: i32) -> (i32, i32) {
    %c0_i32 = arith.constant 0 : i32
    %c0_i32_0 = arith.constant 0 : i32
    return %arg0, %c0_i32 : i32, i32
  }
}

</mosaic_0001>

<bundles_post_ra>
// kernel: tpu_custom_call.1
= control target key start
LH: loop header
LB: loop body
LE: loop exit
PB: predicated region body
PF: predicated region fallthrough
CT: control target
= control target key end

     0   :  { %7 = vsyncpa [#allocation3], 0  ;;  %s729_s0 = inlined_call_operand.vmem [shape: f32[24,1], index: 0, kind: input, shape index: {}]   ;;  %s730_s1 = inlined_call_operand.vmem [shape: f32[1,16], index: 1, kind: input, shape index: {}]   ;;  %s731_s2 = inlined_call_operand.hbm [shape: f32[24,32], index: 2, kind: output, shape index: {}]  }
   0x1   :  { %9 = vsyncpa [#allocation3 + $0x1], 0  ;;  %s605_s9 = smov 0   ;;  %s607_s10 = smov 0  }
   0x2   :  { %s609_s11 = smov 0   ;;  %s611_s12 = smov 0  }
   0x3 LB: > { %s626_s13 = sadd.s32 4294967295, %s579_s12   ;;  %s442_s14 = sadd.s32 4294967294, %s579_s12   ;;  %s579_s12 = sphi %s611_s12, %s737_s12   ;;  %s575_s11 = sphi %s609_s11, %s736_s11   ;;  %s571_s10 = sphi %s607_s10, %s735_s10   ;;  %s567_s9 = sphi %s605_s9, %s734_s9  }
   0x4   : > { %s630_s15 = sadd.s32 1, %s579_s12   ;;  %s69_s16 = sadd.s32 1, %s575_s11 }
   0x5   : > { %s66_s17 = ssub.s32 %s579_s12, %s630_s15  ;;  %p79_p0 = scmp.ne.s32.totalorder %s575_s11, %s571_s10 }
   0x6   : > { %p67_p1 = scmp.eq.s32.totalorder %s66_s17, 0  ;;  %p80_p2 = scmp.eq.s32.totalorder %s626_s13, 2 }
   0x7   : > { %p85_p3 = scmp.ne.s32.totalorder %s571_s10, %s567_s9  ;;  %p86_p4 = scmp.eq.s32.totalorder %s442_s14, 2 }
   0x8   : > { %s641_s18 = scalar_select %p67_p1, %s575_s11, %s69_s16  }
   0x9   : > { %p643_p5 = por %p80_p2, %p79_p0  ;;  %p647_p6 = por %p86_p4, %p85_p3 }
   0xa   : > { %p445_p7 = scmp.ge.s32.totalorder %s579_s12, 1  ;;  %p114_p8 = scmp.lt.s32.totalorder %s579_s12, 4 }
   0xc   : > { %p115_p9 = pnand %p445_p7, %p114_p8 }
   0xd   : > { %p135_p10 = scmp.lt.s32.totalorder (!%p115_p9), %s626_s13, 2  ;;  %v581_v0 = vmov (!%p115_p9), 0   ;;  %v448_v2 = vld [vmem:[%s730_s1] ss:$0 sm:$0xff] (!%p115_p9)  ;;  %v582_v17 = vmov (!%p115_p9), 2102212464  }
   0xe   : > { %118 = sbr.rel (%p115_p9) target bundleno = 367 (0x16f), region = 28  ;;  %512 = vset.pattern.permute.xlu0 (!%p115_p9), %v581_v0  ;;  %v583_v19 = vmov (!%p115_p9), 920167782   ;;  %v584_v23 = vmov (!%p115_p9), 1326507024   ;;  %s588_s28 = smov (!%p115_p9), 16  }
   0xf   : > { %v585_v25 = vmov (!%p115_p9), 683565275   ;;  %v586_v27 = vmov (!%p115_p9), 2475754826   ;;  %v587_v30 = vmov (!%p115_p9), 2131351028  }
  0x10   : > { %s132_s29 = sand.u32 (!%p115_p9), 1, %s571_s10   ;;  %s458_s3 = sshll.u32 (!%p115_p9), %s626_s13, 7 }
  0x11   : > { %s446_s30 = sshll.u32 (!%p115_p9), %s132_s29, 3  ;;  %s687_s8 = scalar_lea.hbm (!%p115_p9), %s731_s2, %s458_s3 }
  0x12   : > { %s134_s4 = scalar_lea.vmem (!%p115_p9), [#allocation2], %s446_s30  ;;  %s370_s14 = scalar_lea.sflag (!%p115_p9), [#allocation3], %s132_s29 }
  0x13   : > { %s383_s5 = sshll.u32 (!%p115_p9), %s134_s4, 4  ;;  %s689_s5 = int_to_ptr.vmem [resolvable:$true] %s383_s5 }
  0x14   : > { %s517_s16 = scalar_lea.vmem (!%p115_p9), %s689_s5, 128 }
  0x15   : > { %s136_s21 = scalar_select %p135_p10, %s626_s13, 2 }
  0x16   : > { %p518_p11 = scmp.ne.s32.totalorder %s689_s5, %s517_s16  ;;  %s589_s13 = smov [#allocation2]  }
  0x17   : > { %s447_s22 = sshll.u32 %s136_s21, 3  ;;  %s521_s17 = sshll.u32 %s589_s13, 4  ;;  %s522_s17 = int_to_ptr.vmem [resolvable:$false] %s521_s17 }
  0x18   : > { %s138_s25 = scalar_lea.vmem %s729_s0, %s447_s22  ;;  %p519_p12 = pnand %p518_p11, %p643_p5 }
  0x19   : > { %v139_v1 = vld [vmem:[%s138_s25] sm:$0xff]  ;;  %s523_s21 = scalar_lea.vmem %s522_s17, 256  ;;  %p524_p0 = scmp.lt.s32.totalorder %s689_s5, %s522_s17 }
  0x1a   : > { %143 = vperm.xlu0 %512, %v139_v1   ;;  %p520_p13 = pneg %p519_p12  ;;  %p525_p1 = scmp.lt.s32.totalorder %s523_s21, %s517_s16 }
  0x1c   : > { %p526_p2 = por %p525_p1, %p524_p0 }
  0x1e   : > { %p527_p3 = pnand %p526_p2, %p520_p13 }
  0x99   : > { %v144_v3 = vpop.permute.xlu0 %143 }
  0x9a   : > { %v152_v4 = vmul.f32 %v448_v2, %v144_v3 }
  0x9c   : > { %v661_v5 = vmul.f32 6.2831855, %v152_v4 }
  0x9e   : > { %v157_v6 = vand.u32 2139095040, %v661_v5  ;;  %v154_v7 = vand.u32 2147483647, %v661_v5  ;;  %vm156_vm7 = vcmp.lt.s32.totalorder %v661_v5, 0  ;;  %vm246_vm15 = vweird.f32 %v661_v5 }
  0xa0   : > { %v158_v8 = vshrl.u32 %v157_v6, 23  ;;  %v161_v10 = vand.u32 8388607, %v154_v7  ;;  %vm155_vm8 = vcmp.le.f32.partialorder %v154_v7, 0.7853982 }
  0xa2   : > { %v449_v9 = vadd.s32 4294967169, %v158_v8  ;;  %v162_v13 = vor.u32 8388608, %v161_v10 }
  0xa4   : > { %v164_v11 = vadd.s32 1, %v449_v9  ;;  %v202_v21 = vshll.u32 %v162_v13, 8 }
  0xa6   : > { %vm165_vm0 = vcmp.gt.s32.totalorder %v164_v11, 0 }
  0xa7   : > { %v166_v12 = vsel %vm165_vm0, %v164_v11, 0  ;;  %vm365_vm0 = vcmask 130048  }
  0xa8   : > { %v168_v14 = vand.u32 31, %v166_v12  ;;  %v167_v15 = vshrl.u32 %v166_v12, 5 }
  0xaa   : > { %v169_v16 = vsub.s32 32, %v168_v14  ;;  %v180_v18 = vshll.u32 %v582_v17, %v168_v14  ;;  %v183_v20 = vshll.u32 %v583_v19, %v168_v14  ;;  %v171_v26 = vshll.u32 %v585_v25, %v168_v14 }
  0xab   : > { %v174_v29 = vshll.u32 %v586_v27, %v168_v14  ;;  %v177_v32 = vshll.u32 %v587_v30, %v168_v14  ;;  %vm189_vm1 = vcmp.lt.s32.totalorder %v167_v15, 4  ;;  %vm186_vm2 = vcmp.lt.s32.totalorder %v167_v15, 1 }
  0xac   : > { %v181_v22 = vshrl.u32 %v583_v19, %v169_v16  ;;  %v184_v24 = vshrl.u32 %v584_v23, %v169_v16  ;;  %v172_v28 = vshrl.u32 %v586_v27, %v169_v16  ;;  %v175_v31 = vshrl.u32 %v587_v30, %v169_v16 }
  0xad   : > { %v178_v33 = vshrl.u32 %v582_v17, %v169_v16  ;;  %v170_v37 = vshrl.u32 %v585_v25, %v169_v16  ;;  %vm187_vm3 = vcmp.lt.s32.totalorder %v167_v15, 2  ;;  %vm188_vm4 = vcmp.lt.s32.totalorder %v167_v15, 3 }
  0xae   : > { %v182_v34 = vor.u32 %v181_v22, %v180_v18  ;;  %v185_v35 = vor.u32 %v184_v24, %v183_v20  ;;  %v173_v36 = vor.u32 %v172_v28, %v171_v26  ;;  %v176_v38 = vor.u32 %v175_v31, %v174_v29 }
  0xaf   : > { %v179_v39 = vor.u32 %v178_v33, %v177_v32 }
  0xb0   : > { %v195_v40 = vsel %vm189_vm1, %v182_v34, 920167782  ;;  %v199_v41 = vsel %vm189_vm1, %v185_v35, 1326507024  ;;  %v194_v43 = vsel %vm186_vm2, %v173_v36, %v176_v38  ;;  %v190_v46 = vsel %vm186_vm2, %v170_v37, %v173_v36 }
  0xb1   : > { %v191_v42 = vsel %vm189_vm1, %v179_v39, 2102212464  ;;  %v196_v44 = vsel %vm188_vm4, %v179_v39, %v195_v40  ;;  %v198_v45 = vsel %vm186_vm2, %v176_v38, %v179_v39  ;;  %v200_v49 = vsel %vm188_vm4, %v182_v34, %v199_v41 }
  0xb2   : > { %v192_v47 = vsel %vm188_vm4, %v176_v38, %v191_v42  ;;  %v197_v48 = vsel %vm187_vm3, %v194_v43, %v196_v44  ;;  %v201_v50 = vsel %vm187_vm3, %v198_v45, %v200_v49  ;;  %vm367_vm1 = vcmask 261120  }
  0xb3   : > { %v667_v51 = vmul.u32.u64.low %v202_v21, %v197_v48  ;;  %v668_v52 = vmul.u32.u64.high %v202_v21, %v197_v48, %v667_v51  ;;  %v670_v53 = vmul.u32.u64.low %v202_v21, %v201_v50  ;;  %v671_v54 = vmul.u32.u64.high %v202_v21, %v201_v50, %v670_v53 }
  0xb4   : > { %v193_v55 = vsel %vm187_vm3, %v190_v46, %v192_v47 }
  0xb5   : > { %v212_v56 = vadd.s32 1, %v668_v52  ;;  %v209_v57 = vmul.u32 %v202_v21, %v193_v55  ;;  %vm211_vm5 = vc.u32 %v671_v54, %v667_v51  ;;  %v210_v6 = vadd.s32 %v667_v51, %v671_v54 }
  0xb7   : > { %v213_v58 = vsel %vm211_vm5, %v212_v56, %v668_v52 }
  0xb8   : > { %v214_v59 = vadd.s32 %v213_v58, %v209_v57 }
  0xba   : > { %v215_v60 = vadd.s32 536870912, %v214_v59 }
  0xbc   : > { %v216_v61 = vshrl.u32 %v215_v60, 30 }
  0xbe   : > { %v217_v62 = vshll.u32 %v216_v61, 30  ;;  %v240_v19 = vsub.s32 4, %v216_v61 }
  0xc0   : > { %v218_v63 = vsub.s32 %v214_v59, %v217_v62  ;;  %v241_v22 = vsel %vm156_vm7, %v240_v19, %v216_v61 }
  0xc1   : > { %v243_v24 = vsel %vm155_vm8, 0, %v241_v22 }
  0xc2   : > { %v220_v0 = vsub.s32 0, %v218_v63  ;;  %v247_v25 = vadd.s32 3, %v243_v24  ;;  %v351_v27 = vand.u32 3, %v243_v24 }
  0xc4   : > { %v450_v1 = vmin.u32 %v220_v0, %v218_v63  ;;  %v248_v26 = vand.u32 3, %v247_v25  ;;  %vm356_vm10 = vcmp.eq.s32.totalorder %v351_v27, 2  ;;  %vm353_vm12 = vcmp.eq.s32.totalorder %v351_v27, 0 }
  0xc5   : > { %vm352_vm14 = vcmp.lt.s32.totalorder %v351_v27, 2 }
  0xc6   : > { %v222_v2 = vclz %v450_v1  ;;  %vm253_vm9 = vcmp.eq.s32.totalorder %v248_v26, 2  ;;  %vm250_vm11 = vcmp.eq.s32.totalorder %v248_v26, 0  ;;  %vm249_vm13 = vcmp.lt.s32.totalorder %v248_v26, 2 }
  0xc8   : > { %v451_v3 = vadd.s32 4294967294, %v222_v2 }
  0xca   : > { %vm452_vm6 = vcmp.lt.s32.totalorder %v451_v3, 0 }
  0xcb   : > { %v225_v4 = vsel %vm452_vm6, 0, %v451_v3 }
  0xcc   : > { %v226_v8 = vsub.s32 32, %v225_v4  ;;  %v230_v9 = vsub.s32 4294967266, %v225_v4  ;;  %v227_v10 = vshll.u32 %v218_v63, %v225_v4 }
  0xce   : > { %v228_v11 = vshrl.u32 %v210_v6, %v226_v8  ;;  %v231_v12 = vadd.s32 127, %v230_v9 }
  0xd0   : > { %v229_v13 = vor.u32 %v228_v11, %v227_v10  ;;  %v232_v14 = vshll.u32 %v231_v12, 23 }
  0xd2   : > { %v233_v15 = vor.u32 4788187, %v232_v14  ;;  %v236_v17 = vcvt.s32.f32 %v229_v13 }
  0xd4   : > { %v234_v16 = vand.u32 2147483647, %v233_v15 }
  0xd6   : > { %v237_v18 = vmul.f32 %v236_v17, %v234_v16 }
  0xd8   : > { %v238_v20 = vxor.u32 2147483648, %v237_v18 }
  0xda   : > { %v239_v21 = vsel %vm156_vm7, %v238_v20, %v237_v18 }
  0xdb   : > { %v242_v23 = vsel %vm155_vm8, %v661_v5, %v239_v21 }
  0xdc   : > { %513 = vcosq.f32 %v242_v23 }
  0xdd   : > { %515 = vsinq.f32 %v242_v23 }
  0xe6   : > { %v514_v28 = vpop.eup %513 }
  0xe7   : > { %v516_v29 = vpop.eup %515  ;;  %v254_v30 = vxor.u32 2147483648, %v514_v28 }
  0xe8   : > { %v251_v31 = vxor.u32 2147483648, %v516_v29 }
  0xe9   : > { %v358_v7 = vsel %vm356_vm10, %v254_v30, %v516_v29  ;;  %v255_v32 = vsel %vm253_vm9, %v254_v30, %v516_v29 }
  0xea   : > { %v355_v33 = vsel %vm353_vm12, %v514_v28, %v251_v31  ;;  %v252_v34 = vsel %vm250_vm11, %v514_v28, %v251_v31 }
  0xeb   : > { %v359_v35 = vsel %vm352_vm14, %v355_v33, %v358_v7  ;;  %v256_v36 = vsel %vm249_vm13, %v252_v34, %v255_v32 }
  0xec   : > { %v360_v37 = vsel %vm246_vm15, nan, %v359_v35  ;;  %v257_v38 = vsel %vm246_vm15, nan, %v256_v36 }
  0xed   : > { %362 = vrot.lane.b32.xlu0 %v360_v37, %s588_s28 }
 0x15f   : > { %v363_v39 = vpop.permute.xlu0 %362 }
 0x160   : > { %v366_v5 = vsel %vm365_vm0, %v257_v38, %v363_v39 }
 0x161   : > { %368 = vst.msk [vmem:[%s134_s4] sm:$0xff] %vm367_vm1, %v366_v5 }
 0x162   : > { %530 = shalt.err (!%p527_p3)
}
 0x163   : > { %s531_s22 = scalar_lea.hbm %s687_s8, 128  ;;  %s535_s25 = scalar_lea.hbm %s731_s2, 384 }
 0x164   : > { %p532_p4 = scmp.ne.s32.totalorder %s687_s8, %s531_s22  ;;  %p536_p9 = scmp.lt.u32.totalorder %s687_s8, %s731_s2 }
 0x165   : > { %p537_p10 = scmp.lt.u32.totalorder %s535_s25, %s531_s22  ;;  %p539_p12 = scmp.lt.u32.totalorder %s531_s22, %s687_s8 }
 0x166   : > { %p533_p7 = pnand %p532_p4, %p643_p5 }
 0x167   : > { %p538_p11 = por %p537_p10, %p536_p9 }
 0x168   : > { %p534_p8 = pneg %p533_p7 }
 0x169   : > { %p540_p13 = por %p539_p12, %p538_p11 }
 0x16b   : > { %p541_p0 = pnand %p540_p13, %p534_p8 }
 0x16d   : > { %544 = shalt.err (!%p541_p0)
}
 0x16e   : > { %465 = dma.vmem_to_hbm [thread:$0]  (%p643_p5), %s689_s5, 128, %s687_s8, %s370_s14  }
 0x16f PF: > { %p471_p1 = scmp.ge.s32.totalorder %s579_s12, 2  ;;  %s395_s28 = sand.u32 1, %s567_s9  }
 0x170   : > { %s396_s29 = scalar_lea.sflag [#allocation3], %s395_s28 }
 0x171   : > { %p468_p2 = pnand %p471_p1, %p647_p6 }
 0x173   : > { %562 = dma.done.wait (!%p468_p2), %s396_s29, 128  }
 0x174   : > { %564 = vsyncadd (!%p468_p2), %s396_s29, 4294967168  ;;  %p12_p3 = scmp.ge.s32.totalorder %s630_s15, 5   ;;  %s734_s9 = smov %s571_s10 }
 0x175   : > { %s735_s10 = smov %s575_s11  ;;  %s736_s11 = smov %s641_s18 }
 0x176   : > { %s737_s12 = smov %s630_s15  ;;  %14 = sbr.rel (!%p12_p3) target bundleno = 3 (0x3), region = 63 }
 0x17d   :  { %401 = vsyncpa [#allocation3], 1 }
 0x17e   :  { %403 = vsyncpa [#allocation3 + $0x1], 1 }

</bundles_post_ra>
